<compile_context>
chip_gen: v6e
topology: v6e:2x2x1
jax: 0.10.0
libtpu: 0.0.40
codegen_flags: <defaults>
</compile_context>

<pallas_src>
import jax
import jax.numpy as jnp
from jax.experimental import pallas as pl
from jax.experimental.pallas import tpu as pltpu


def _round_up(n, m):
    return ((n + m - 1) // m) * m


def _vmem_config():
    """Explicit per-chip scoped-VMEM limit and the per-step tile budget derived from it.
    v5e/v6e have 128 MiB physical VMEM per core; v7x has 64 MiB per TensorCore."""
    try:
        cap = int(pltpu.get_tpu_info().vmem_capacity_bytes)
    except Exception:
        cap = 64 * 1024 * 1024                      # conservative fallback (v7x per-TC)
    limit = min(cap, max(32 * 1024 * 1024, (cap * 3) // 4))
    budget = (limit * 4) // 5                       # headroom for compiler-internal scratch
    return limit, budget


def _num_tensorcores():
    """Best-effort TensorCore count (v7x has 2 per chip); harmless if it returns 1."""
    try:
        info = pltpu.get_tpu_info()
        for attr in ("num_cores", "tensorcores_per_chip", "cores_per_chip", "num_tensorcores"):
            v = getattr(info, attr, None)
            if isinstance(v, int) and v > 0:
                return v
    except Exception:
        pass
    try:
        v = getattr(jax.devices()[0], "num_cores", None)
        if isinstance(v, int) and v > 0:
            return v
    except Exception:
        pass
    return 1


def _choose_tiling(M, C, O_pad, in_item, out_item, budget, num_cores):
    """Pick (TM, TC): TM a multiple of 8 (or == M), TC == C or a multiple-of-128 divisor
    of C, such that the FULL per-step VMEM footprint (double-buffered inputs / weights /
    outputs + f32 accumulator + in-kernel temporaries) stays under `budget`."""

    def footprint(tm, tc):
        return (2 * 4 * tm * tc * in_item            # 2x (4, TM, TC) input buffers
                + 2 * tc * O_pad * in_item           # 2x (TC, O_pad) weight buffers
                + 2 * 2 * tc * 4                     # 2x scale + bias buffers
                + 2 * tm * O_pad * out_item          # 2x (TM, O_pad) output buffers
                + tm * O_pad * 4                     # f32 accumulator scratch
                + (3 * tm * tc + tm * O_pad) * 4)    # in-kernel live temporaries (estimate)

    # C-tile candidates: full C first (single reduction step); fall back to power-of-two
    # multiples of 128 that divide C when full-C blocks do not fit (very large C).
    c_tiles = [C]
    d = 1 << max(C.bit_length() - 1, 0)
    while d >= 128:
        if d < C and C % d == 0:
            c_tiles.append(d)
        d //= 2

    for tc in c_tiles:
        tm = M if M <= 1024 else 1024
        if tm != M:
            tm = max(8, (tm // 8) * 8)
        while tm > 8 and footprint(tm, tc) > budget:
            nxt = ((tm // 2 + 7) // 8) * 8
            tm = max(8, min(nxt, tm - 8))
        if footprint(tm, tc) > budget:
            continue
        # Multi-TensorCore chips (v7x): keep the number of M tiles a multiple of the core
        # count so the "parallel" grid axis splits evenly; prefer exact divisors of M.
        if num_cores > 1 and M >= 16 * num_cores:
            best = None
            cand = (min(tm, M) // 8) * 8
            while cand >= 8:
                if pl.cdiv(M, cand) % num_cores == 0:
                    if M % cand == 0:
                        best = cand
                        break
                    if best is None:
                        best = cand
                cand -= 8
            if best is not None:
                tm = best
        return tm, tc
    return 8, min(c_tiles)


def transition_kernel(x_ref, scale_ref, bias_ref, w_ref, o_ref, acc_ref):
    # x_ref    : (4, TM, TC)   four 2x2 pool offsets, TM pooled pixels, TC channels (lanes)
    # scale_ref: (1, TC)  f32  folded BN scale = gamma / sqrt(var + eps)
    # bias_ref : (1, TC)  f32  folded BN bias  = beta - mean * scale
    # w_ref    : (TC, O_pad)   1x1 conv weight chunk (transposed, * 0.25 pool factor)
    # o_ref    : (TM, O_pad)
    # acc_ref  : (TM, O_pad) f32 scratch accumulator (resident across the C-reduction axis)
    k = pl.program_id(1)

    @pl.when(k == 0)
    def _():
        acc_ref[...] = jnp.zeros_like(acc_ref)

    s = scale_ref[...]
    b = bias_ref[...]
    # BN + ReLU in f32, accumulated over the 4 pool offsets one (TM, TC) tile at a time
    # (bounds the live intermediate; no (4, TM, TC) temporary).
    pooled = jnp.maximum(x_ref[0].astype(jnp.float32) * s + b, 0.0)
    for off in range(1, 4):
        pooled = pooled + jnp.maximum(x_ref[off].astype(jnp.float32) * s + b, 0.0)

    acc_ref[...] += jnp.dot(pooled.astype(w_ref.dtype), w_ref[...],
                            preferred_element_type=jnp.float32)       # MXU

    @pl.when(k == pl.num_programs(1) - 1)
    def _():
        o_ref[...] = acc_ref[...].astype(o_ref.dtype)


def transition_forward(x, gamma, beta, conv_w, eps=1e-5,
                       matmul_dtype=jnp.bfloat16, out_dtype=None):
    """x: (N, C, H, W), conv_w: (O, C, 1, 1).  Returns (N, O, H//2, W//2)."""
    N, C, H, W = x.shape
    assert H % 2 == 0 and W % 2 == 0, "2x2 non-overlapping avg-pool requires even H and W"
    O = conv_w.shape[0]
    H2, W2 = H // 2, W // 2
    M = N * H2 * W2
    O_pad = _round_up(O, 128)                         # lane-dense output stores
    if out_dtype is None:
        out_dtype = x.dtype

    # --- single fused repack NCHW -> (4, N*H2*W2, C), cast to the MXU input dtype ---
    x_packed = jnp.transpose(x.reshape(N, C, H2, 2, W2, 2),
                             (3, 5, 0, 2, 4, 1)).reshape(4, M, C).astype(matmul_dtype)

    # --- BatchNorm (training-mode) statistics from x_packed (f32 accumulation) ---
    # Reading x_packed (half-width in the bf16 path) instead of x removes one f32 pass.
    xp32 = x_packed.astype(jnp.float32)
    cnt = 4 * M                                        # == N * H * W
    s1 = jnp.sum(xp32, axis=(0, 1))
    s2 = jnp.sum(xp32 * xp32, axis=(0, 1))
    mean = s1 / cnt
    # NOTE: E[x^2]-E[x]^2 can cancel for large-mean activations; clamp keeps it non-negative.
    var = jnp.maximum(s2 / cnt - mean * mean, 0.0)
    scale = gamma.astype(jnp.float32) / jnp.sqrt(var + eps)
    bias = beta.astype(jnp.float32) - mean * scale
    scale2 = scale.reshape(1, C)
    bias2 = bias.reshape(1, C)

    # --- conv weight (O, C, 1, 1) -> (C, O_pad); fold 0.25 pool factor; MXU dtype ---
    w2 = jnp.transpose(conv_w[:, :, 0, 0], (1, 0)).astype(jnp.float32) * 0.25
    w2 = jnp.pad(w2, ((0, 0), (0, O_pad - O))).astype(matmul_dtype)

    in_item = jnp.dtype(matmul_dtype).itemsize
    out_item = jnp.dtype(out_dtype).itemsize
    vmem_limit, vmem_budget = _vmem_config()
    num_cores = _num_tensorcores()
    TM, TC = _choose_tiling(M, C, O_pad, in_item, out_item, vmem_budget, num_cores)
    num_m = pl.cdiv(M, TM)
    num_k = pl.cdiv(C, TC)

    cost = pl.CostEstimate(
        flops=2 * M * C * O_pad + 12 * M * C,
        transcendentals=0,
        bytes_accessed=(4 * M * C * in_item + C * O_pad * in_item
                        + M * O_pad * out_item + 4 * C * 4),
    )

    out_flat = pl.pallas_call(
        transition_kernel,
        out_shape=jax.ShapeDtypeStruct((M, O_pad), out_dtype),
        grid_spec=pltpu.PrefetchScalarGridSpec(
            num_scalar_prefetch=0,
            grid=(num_m, num_k),
            in_specs=[
                pl.BlockSpec((4, TM, TC), lambda i, k: (0, i, k)),
                pl.BlockSpec((1, TC), lambda i, k: (0, k)),
                pl.BlockSpec((1, TC), lambda i, k: (0, k)),
                pl.BlockSpec((TC, O_pad), lambda i, k: (k, 0)),
            ],
            out_specs=pl.BlockSpec((TM, O_pad), lambda i, k: (i, 0)),
            scratch_shapes=[pltpu.VMEM((TM, O_pad), jnp.float32)],
        ),
        compiler_params=pltpu.CompilerParams(
            dimension_semantics=("parallel", "arbitrary"),
            vmem_limit_bytes=vmem_limit,
        ),
        cost_estimate=cost,
    )(x_packed, scale2, bias2, w2)

    # --- (M, O_pad) -> NCHW (N, O, H2, W2); crop lane padding (fuses with the transpose) ---
    out = out_flat[:, :O].reshape(N, H2, W2, O)
    return jnp.transpose(out, (0, 3, 1, 2))


def transition_reference(x, gamma, beta, conv_w, eps=1e-5):
    """Pure-JAX reference mirroring the PyTorch forward (training-mode BN)."""
    mean = jnp.mean(x, axis=(0, 2, 3))
    var = jnp.mean((x - mean[None, :, None, None]) ** 2, axis=(0, 2, 3))
    xn = (x - mean[None, :, None, None]) / jnp.sqrt(var[None, :, None, None] + eps)
    xn = xn * gamma[None, :, None, None] + beta[None, :, None, None]
    z = jnp.maximum(xn, 0.0)
    y = jnp.einsum("nchw,oc->nohw", z, conv_w[:, :, 0, 0])
    N, O, H, W = y.shape
    return y.reshape(N, O, H // 2, 2, W // 2, 2).mean(axis=(3, 5))


if __name__ == "__main__":
    # Small shapes consistent with the module: batch=2, nChannels=4, spatial=16, nOutChannels=8
    N, C, H, W = 2, 4, 16, 16
    O = 8

    key = jax.random.PRNGKey(0)
    kx, kw = jax.random.split(key)
    x = jax.random.normal(kx, (N, C, H, W), dtype=jnp.float32)

    # Deterministic parameter init (PyTorch defaults: BN weight=1, bias=0;
    # conv kaiming-uniform bound = 1/sqrt(C*1*1)).
    gamma = jnp.ones((C,), dtype=jnp.float32)
    beta = jnp.zeros((C,), dtype=jnp.float32)
    bound = 1.0 / (C ** 0.5)
    conv_w = jax.random.uniform(kw, (O, C, 1, 1), minval=-bound, maxval=bound,
                                dtype=jnp.float32)

    ref = transition_reference(x, gamma, beta, conv_w)

    # Default path: bf16 packed input + bf16 weight on the MXU, f32 accumulation.
    out = jax.block_until_ready(transition_forward(x, gamma, beta, conv_w))
    assert out.shape == (N, O, H // 2, W // 2), out.shape
    assert jnp.allclose(out, ref, atol=5e-2, rtol=5e-2), "bf16 path mismatch vs reference"

    # Full-f32 path: strict check.
    out_f32 = jax.block_until_ready(
        transition_forward(x, gamma, beta, conv_w, matmul_dtype=jnp.float32))
    assert jnp.allclose(out_f32, ref, atol=1e-4, rtol=1e-4), "f32 path mismatch vs reference"

    print("KERNEL_OK")
</pallas_src>

<mosaic_0001>
module attributes {stable_mosaic.version = 11 : i64} {
  func.func @transition_kernel(%arg0: i32, %arg1: i32, %arg2: memref<4x128x4xbf16, #tpu.memory_space<vmem>>, %arg3: memref<1x4xf32, #tpu.memory_space<vmem>>, %arg4: memref<1x4xf32, #tpu.memory_space<vmem>>, %arg5: memref<4x128xbf16, #tpu.memory_space<vmem>>, %arg6: memref<128x128xf32, #tpu.memory_space<vmem>>, %arg7: memref<128x128xf32, #tpu.memory_space<vmem>>) attributes {dimension_semantics = [#tpu.dimension_semantics<parallel>, #tpu.dimension_semantics<arbitrary>], iteration_bounds = array<i64: 1, 1>, scalar_prefetch = 0 : i64, scratch_operands = 1 : i64, tpu.core_type = #tpu.core_type<tc>, window_params = [{transform_indices = @transform_0, window_bounds = array<i64: 4, 128, 4>}, {transform_indices = @transform_1, window_bounds = array<i64: 1, 4>}, {transform_indices = @transform_2, window_bounds = array<i64: 1, 4>}, {transform_indices = @transform_3, window_bounds = array<i64: 4, 128>}, {transform_indices = @transform_4, window_bounds = array<i64: 128, 128>}]} {
    %c0_i32 = arith.constant 0 : i32
    %0 = arith.cmpi eq, %arg1, %c0_i32 : i32
    %1 = arith.extui %0 : i1 to i32
    %c0_i32_0 = arith.constant 0 : i32
    %2 = arith.cmpi ne, %1, %c0_i32_0 : i32
    scf.if %2 {
      %cst_25 = arith.constant 0.000000e+00 : f32
      %53 = vector.broadcast %cst_25 : f32 to vector<128x128xf32>
      %c0_26 = arith.constant 0 : index
      %c0_27 = arith.constant 0 : index
      %54 = vector.load %arg7[%c0_26, %c0_27] : memref<128x128xf32, #tpu.memory_space<vmem>>, vector<128x128xf32>
      tpu.vector_store %arg7[%c0_26, %c0_27], %53 {strides = array<i32>} : memref<128x128xf32, #tpu.memory_space<vmem>>, vector<128x128xf32>,
    } else {
    }
    %c0 = arith.constant 0 : index
    %c0_1 = arith.constant 0 : index
    %3 = vector.load %arg3[%c0, %c0_1] : memref<1x4xf32, #tpu.memory_space<vmem>>, vector<1x4xf32>
    %c0_2 = arith.constant 0 : index
    %c0_3 = arith.constant 0 : index
    %4 = vector.load %arg4[%c0_2, %c0_3] : memref<1x4xf32, #tpu.memory_space<vmem>>, vector<1x4xf32>
    %c0_4 = arith.constant 0 : index
    %c0_5 = arith.constant 0 : index
    %c0_6 = arith.constant 0 : index
    %5 = vector.load %arg2[%c0_4, %c0_5, %c0_6] : memref<4x128x4xbf16, #tpu.memory_space<vmem>>, vector<1x128x4xbf16>
    %6 = vector.shape_cast %5 : vector<1x128x4xbf16> to vector<128x4xbf16>
    %7 = arith.extf %6 : vector<128x4xbf16> to vector<128x4xf32>
    %8 = vector.broadcast %3 : vector<1x4xf32> to vector<128x4xf32>
    %9 = arith.mulf %7, %8 : vector<128x4xf32>
    %10 = vector.broadcast %4 : vector<1x4xf32> to vector<128x4xf32>
    %11 = arith.addf %9, %10 : vector<128x4xf32>
    %cst = arith.constant 0.000000e+00 : f32
    %12 = vector.broadcast %cst : f32 to vector<128x4xf32>
    %13 = arith.maximumf %11, %12 : vector<128x4xf32>
    %c1 = arith.constant 1 : index
    %c0_7 = arith.constant 0 : index
    %c0_8 = arith.constant 0 : index
    %14 = vector.load %arg2[%c1, %c0_7, %c0_8] : memref<4x128x4xbf16, #tpu.memory_space<vmem>>, vector<1x128x4xbf16>
    %15 = vector.shape_cast %14 : vector<1x128x4xbf16> to vector<128x4xbf16>
    %16 = arith.extf %15 : vector<128x4xbf16> to vector<128x4xf32>
    %17 = vector.broadcast %3 : vector<1x4xf32> to vector<128x4xf32>
    %18 = arith.mulf %16, %17 : vector<128x4xf32>
    %19 = vector.broadcast %4 : vector<1x4xf32> to vector<128x4xf32>
    %20 = arith.addf %18, %19 : vector<128x4xf32>
    %cst_9 = arith.constant 0.000000e+00 : f32
    %21 = vector.broadcast %cst_9 : f32 to vector<128x4xf32>
    %22 = arith.maximumf %20, %21 : vector<128x4xf32>
    %23 = arith.addf %13, %22 : vector<128x4xf32>
    %c2 = arith.constant 2 : index
    %c0_10 = arith.constant 0 : index
    %c0_11 = arith.constant 0 : index
    %24 = vector.load %arg2[%c2, %c0_10, %c0_11] : memref<4x128x4xbf16, #tpu.memory_space<vmem>>, vector<1x128x4xbf16>
    %25 = vector.shape_cast %24 : vector<1x128x4xbf16> to vector<128x4xbf16>
    %26 = arith.extf %25 : vector<128x4xbf16> to vector<128x4xf32>
    %27 = vector.broadcast %3 : vector<1x4xf32> to vector<128x4xf32>
    %28 = arith.mulf %26, %27 : vector<128x4xf32>
    %29 = vector.broadcast %4 : vector<1x4xf32> to vector<128x4xf32>
    %30 = arith.addf %28, %29 : vector<128x4xf32>
    %cst_12 = arith.constant 0.000000e+00 : f32
    %31 = vector.broadcast %cst_12 : f32 to vector<128x4xf32>
    %32 = arith.maximumf %30, %31 : vector<128x4xf32>
    %33 = arith.addf %23, %32 : vector<128x4xf32>
    %c3 = arith.constant 3 : index
    %c0_13 = arith.constant 0 : index
    %c0_14 = arith.constant 0 : index
    %34 = vector.load %arg2[%c3, %c0_13, %c0_14] : memref<4x128x4xbf16, #tpu.memory_space<vmem>>, vector<1x128x4xbf16>
    %35 = vector.shape_cast %34 : vector<1x128x4xbf16> to vector<128x4xbf16>
    %36 = arith.extf %35 : vector<128x4xbf16> to vector<128x4xf32>
    %37 = vector.broadcast %3 : vector<1x4xf32> to vector<128x4xf32>
    %38 = arith.mulf %36, %37 : vector<128x4xf32>
    %39 = vector.broadcast %4 : vector<1x4xf32> to vector<128x4xf32>
    %40 = arith.addf %38, %39 : vector<128x4xf32>
    %cst_15 = arith.constant 0.000000e+00 : f32
    %41 = vector.broadcast %cst_15 : f32 to vector<128x4xf32>
    %42 = arith.maximumf %40, %41 : vector<128x4xf32>
    %43 = arith.addf %33, %42 : vector<128x4xf32>
    %c0_16 = arith.constant 0 : index
    %c0_17 = arith.constant 0 : index
    %44 = vector.load %arg7[%c0_16, %c0_17] : memref<128x128xf32, #tpu.memory_space<vmem>>, vector<128x128xf32>
    %45 = arith.truncf %43 : vector<128x4xf32> to vector<128x4xbf16>
    %c0_18 = arith.constant 0 : index
    %c0_19 = arith.constant 0 : index
    %46 = vector.load %arg5[%c0_18, %c0_19] : memref<4x128xbf16, #tpu.memory_space<vmem>>, vector<4x128xbf16>
    %cst_20 = arith.constant dense<0.000000e+00> : vector<128x128xf32>
    %47 = tpu.matmul %45, %46, %cst_20 {dimension_numbers = #tpu.dot_dimension_numbers<[1], [0], [0], [1], [0, 0, 1, 1], [], []>} : vector<128x4xbf16>, vector<4x128xbf16>, vector<128x128xf32> -> vector<128x128xf32>
    %48 = arith.addf %44, %47 : vector<128x128xf32>
    %c0_21 = arith.constant 0 : index
    %c0_22 = arith.constant 0 : index
    %49 = vector.load %arg7[%c0_21, %c0_22] : memref<128x128xf32, #tpu.memory_space<vmem>>, vector<128x128xf32>
    tpu.vector_store %arg7[%c0_21, %c0_22], %48 {strides = array<i32>} : memref<128x128xf32, #tpu.memory_space<vmem>>, vector<128x128xf32>,
    %c0_i32_23 = arith.constant 0 : i32
    %50 = arith.cmpi eq, %arg1, %c0_i32_23 : i32
    %51 = arith.extui %50 : i1 to i32
    %c0_i32_24 = arith.constant 0 : i32
    %52 = arith.cmpi ne, %51, %c0_i32_24 : i32
    scf.if %52 {
      %c0_25 = arith.constant 0 : index
      %c0_26 = arith.constant 0 : index
      %53 = vector.load %arg7[%c0_25, %c0_26] : memref<128x128xf32, #tpu.memory_space<vmem>>, vector<128x128xf32>
      %c0_27 = arith.constant 0 : index
      %c0_28 = arith.constant 0 : index
      %54 = vector.load %arg6[%c0_27, %c0_28] : memref<128x128xf32, #tpu.memory_space<vmem>>, vector<128x128xf32>
      tpu.vector_store %arg6[%c0_27, %c0_28], %53 {strides = array<i32>} : memref<128x128xf32, #tpu.memory_space<vmem>>, vector<128x128xf32>,
    } else {
    }
    return
  }
  func.func @transform_0(%arg0: i32, %arg1: i32) -> (i32, i32, i32) {
    %c0_i32 = arith.constant 0 : i32
    %c0_i32_0 = arith.constant 0 : i32
    return %c0_i32, %arg0, %arg1 : i32, i32, i32
  }
  func.func @transform_1(%arg0: i32, %arg1: i32) -> (i32, i32) {
    %c0_i32 = arith.constant 0 : i32
    %c0_i32_0 = arith.constant 0 : i32
    return %c0_i32, %arg1 : i32, i32
  }
  func.func @transform_2(%arg0: i32, %arg1: i32) -> (i32, i32) {
    %c0_i32 = arith.constant 0 : i32
    %c0_i32_0 = arith.constant 0 : i32
    return %c0_i32, %arg1 : i32, i32
  }
  func.func @transform_3(%arg0: i32, %arg1: i32) -> (i32, i32) {
    %c0_i32 = arith.constant 0 : i32
    %c0_i32_0 = arith.constant 0 : i32
    return %arg1, %c0_i32 : i32, i32
  }
  func.func @transform_4(%arg0: i32, %arg1: i32) -> (i32, i32) {
    %c0_i32 = arith.constant 0 : i32
    %c0_i32_0 = arith.constant 0 : i32
    return %arg0, %c0_i32 : i32, i32
  }
}

</mosaic_0001>

<bundles_post_ra>
// kernel: tpu_custom_call.1
= control target key start
LH: loop header
LB: loop body
LE: loop exit
PB: predicated region body
PF: predicated region fallthrough
CT: control target
= control target key end

     0   :  { %vm474_vm0 = vcmask 1041408   ;;  %vm449_vm1 = vcmask 31744   ;;  %s1207_s0 = inlined_call_operand.vmem [shape: bf16[4,128,4], index: 0, kind: input, shape index: {}]   ;;  %s1208_s1 = inlined_call_operand.vmem [shape: f32[1,4], index: 1, kind: input, shape index: {}]   ;;  %s1209_s2 = inlined_call_operand.vmem [shape: f32[1,4], index: 2, kind: input, shape index: {}]   ;;  %s1210_s3 = inlined_call_operand.vmem [shape: bf16[4,128], index: 3, kind: input, shape index: {}]   ;;  %s1211_s4 = inlined_call_operand.hbm [shape: f32[128,128], index: 4, kind: output, shape index: {}]  }
   0x1   :  { %v448_v0 = vld [vmem:[%s1210_s3] sm:$0x3] }
   0x2   :  { %v965_v1 = vld [vmem:[%s1208_s1] ss:$0 sm:$0xff]  ;;  %904 = vmatprep.subr.msk.bf16.mxu0 %vm474_vm0, %v448_v0  ;;  %905 = vmatprep.subr.msk.bf16.mxu1 %vm474_vm0, %v448_v0  ;;  %v476_v3 = vsel %vm474_vm0, %v448_v0, 0 }
   0x3   :  { %v717_v2 = vld [vmem:[%s1207_s0] sm:$0xff]   ;;  %885 = vmatpush3.bf16.msra.mxu0 %v476_v3  ;;  %903 = vmatpush3.bf16.msra.mxu1 %v476_v3 }
   0x4   :  { %v718_v4 = vunpack.c.l.bf16 %v717_v2  ;;  %v719_v5 = vunpack.c.h.bf16 %v717_v2  ;;  %v851_v6 = vld [vmem:[%s1207_s0 + $0x40] sm:$0xff]  }
   0x5   :  { %v859_v7 = vld [vmem:[%s1207_s0 + $0x80] sm:$0xff]   ;;  %v750_v9 = vunpack.c.l.bf16 %v851_v6  ;;  %v751_v10 = vunpack.c.h.bf16 %v851_v6 }
   0x6   :  { %v979_v8 = vld [vmem:[%s1209_s2] ss:$0 sm:$0xff]  ;;  %v782_v11 = vunpack.c.l.bf16 %v859_v7  ;;  %v783_v12 = vunpack.c.h.bf16 %v859_v7  ;;  %v79_v14 = vmul.f32 %v718_v4, %v965_v1  ;;  %v80_v15 = vmul.f32 %v719_v5, %v965_v1 }
   0x7   :  { %v867_v13 = vld [vmem:[%s1207_s0 + $0xc0] sm:$0xff]   ;;  %v166_v18 = vmul.f32 %v750_v9, %v965_v1  ;;  %v167_v19 = vmul.f32 %v751_v10, %v965_v1 }
   0x8   :  { %v814_v16 = vunpack.c.l.bf16 %v867_v13  ;;  %v815_v17 = vunpack.c.h.bf16 %v867_v13  ;;  %v263_v20 = vmul.f32 %v782_v11, %v965_v1  ;;  %v264_v21 = vmul.f32 %v783_v12, %v965_v1  ;;  %v847_v30 = vld [vmem:[%s1207_s0 + $0x20] sm:$0xff]  }
   0x9   :  { %v101_v22 = vadd.f32 %v979_v8, %v79_v14  ;;  %v102_v23 = vadd.f32 %v979_v8, %v80_v15  ;;  %v182_v26 = vadd.f32 %v979_v8, %v166_v18  ;;  %v183_v27 = vadd.f32 %v979_v8, %v167_v19  ;;  %v855_v35 = vld [vmem:[%s1207_s0 + $0x60] sm:$0xff]  }
   0xa   :  { %v360_v24 = vmul.f32 %v814_v16, %v965_v1  ;;  %v361_v25 = vmul.f32 %v815_v17, %v965_v1  ;;  %v279_v28 = vadd.f32 %v979_v8, %v263_v20  ;;  %v280_v29 = vadd.f32 %v979_v8, %v264_v21  ;;  %v863_v40 = vld [vmem:[%s1207_s0 + $0xa0] sm:$0xff]  }
   0xb   :  { %v117_v31 = vmax.f32 %v101_v22, 0.0  ;;  %v118_v32 = vmax.f32 %v102_v23, 0.0  ;;  %v198_v36 = vmax.f32 %v182_v26, 0.0  ;;  %v199_v37 = vmax.f32 %v183_v27, 0.0 }
   0xc   :  { %v376_v33 = vadd.f32 %v979_v8, %v360_v24  ;;  %v377_v34 = vadd.f32 %v979_v8, %v361_v25  ;;  %v295_v38 = vmax.f32 %v279_v28, 0.0  ;;  %v296_v39 = vmax.f32 %v280_v29, 0.0 }
   0xd   :  { %v734_v43 = vunpack.c.l.bf16 %v847_v30  ;;  %v735_v44 = vunpack.c.h.bf16 %v847_v30  ;;  %v214_v45 = vadd.f32 %v198_v36, %v117_v31  ;;  %v215_v46 = vadd.f32 %v199_v37, %v118_v32 }
   0xe   :  { %v392_v41 = vmax.f32 %v376_v33, 0.0  ;;  %v393_v42 = vmax.f32 %v377_v34, 0.0  ;;  %v766_v47 = vunpack.c.l.bf16 %v855_v35  ;;  %v767_v48 = vunpack.c.h.bf16 %v855_v35 }
   0xf   :  { %v87_v49 = vmul.f32 %v734_v43, %v965_v1  ;;  %v88_v50 = vmul.f32 %v735_v44, %v965_v1  ;;  %v798_v51 = vunpack.c.l.bf16 %v863_v40  ;;  %v799_v52 = vunpack.c.h.bf16 %v863_v40 }
  0x10   :  { %v311_v53 = vadd.f32 %v295_v38, %v214_v45  ;;  %v312_v54 = vadd.f32 %v296_v39, %v215_v46  ;;  %v174_v55 = vmul.f32 %v766_v47, %v965_v1  ;;  %v175_v56 = vmul.f32 %v767_v48, %v965_v1 }
  0x11   :  { %9 = vsyncpa [#allocation4], 0  ;;  %v109_v57 = vadd.f32 %v979_v8, %v87_v49  ;;  %v110_v58 = vadd.f32 %v979_v8, %v88_v50  ;;  %v271_v59 = vmul.f32 %v798_v51, %v965_v1  ;;  %v272_v60 = vmul.f32 %v799_v52, %v965_v1  ;;  %v871_v61 = vld [vmem:[%s1207_s0 + $0xe0] sm:$0xff]   ;;  %v844_v3 = vld [vmem:[%s1207_s0 + $0x8] sm:$0xff]  }
  0x12   :  { %v408_v62 = vadd.f32 %v392_v41, %v311_v53  ;;  %v409_v63 = vadd.f32 %v393_v42, %v312_v54  ;;  %v190_v0 = vadd.f32 %v979_v8, %v174_v55  ;;  %v191_v2 = vadd.f32 %v979_v8, %v175_v56  ;;  %v852_v13 = vld [vmem:[%s1207_s0 + $0x48] sm:$0xff]  }
  0x13   :  { %v125_v4 = vmax.f32 %v109_v57, 0.0  ;;  %v126_v5 = vmax.f32 %v110_v58, 0.0  ;;  %v287_v6 = vadd.f32 %v979_v8, %v271_v59  ;;  %v288_v7 = vadd.f32 %v979_v8, %v272_v60  ;;  %v860_v26 = vld [vmem:[%s1207_s0 + $0x88] sm:$0xff]  }
  0x14   :  { %v440_v9 = vpack.c.bf16 %v409_v63, %v408_v62  ;;  %v206_v10 = vmax.f32 %v190_v0, 0.0  ;;  %v207_v11 = vmax.f32 %v191_v2, 0.0  ;;  %v830_v12 = vunpack.c.l.bf16 %v871_v61  ;;  %v868_v39 = vld [vmem:[%s1207_s0 + $0xc8] sm:$0xff]  }
  0x15   :  { %v303_v14 = vmax.f32 %v287_v6, 0.0  ;;  %v304_v15 = vmax.f32 %v288_v7, 0.0  ;;  %v831_v16 = vunpack.c.h.bf16 %v871_v61  ;;  %v722_v17 = vunpack.c.l.bf16 %v844_v3  ;;  %v848_v44 = vld [vmem:[%s1207_s0 + $0x28] sm:$0xff]  }
  0x16   :  { %886 = vmatprep.mubr.msk.bf16.mxu0 %vm449_vm1, %v440_v9  ;;  %v222_v18 = vadd.f32 %v206_v10, %v125_v4  ;;  %v223_v19 = vadd.f32 %v207_v11, %v126_v5  ;;  %v368_v20 = vmul.f32 %v830_v12, %v965_v1  ;;  %v723_v21 = vunpack.c.h.bf16 %v844_v3  ;;  %v856_v57 = vld [vmem:[%s1207_s0 + $0x68] sm:$0xff]  }
  0x17   :  { %v369_v22 = vmul.f32 %v831_v16, %v965_v1  ;;  %v81_v23 = vmul.f32 %v722_v17, %v965_v1  ;;  %v754_v24 = vunpack.c.l.bf16 %v852_v13  ;;  %v755_v25 = vunpack.c.h.bf16 %v852_v13  ;;  %v864_v7 = vld [vmem:[%s1207_s0 + $0xa8] sm:$0xff]  }
  0x18   :  { %v319_v27 = vadd.f32 %v303_v14, %v222_v18  ;;  %v320_v28 = vadd.f32 %v304_v15, %v223_v19  ;;  %v384_v29 = vadd.f32 %v979_v8, %v368_v20  ;;  %v82_v30 = vmul.f32 %v723_v21, %v965_v1  ;;  %v872_v21 = vld [vmem:[%s1207_s0 + $0xe8] sm:$0xff]  }
  0x19   :  { %v385_v31 = vadd.f32 %v979_v8, %v369_v22  ;;  %v103_v32 = vadd.f32 %v979_v8, %v81_v23  ;;  %v168_v33 = vmul.f32 %v754_v24, %v965_v1  ;;  %v169_v34 = vmul.f32 %v755_v25, %v965_v1 }
  0x1a   :  { %v400_v35 = vmax.f32 %v384_v29, 0.0  ;;  %v104_v36 = vadd.f32 %v979_v8, %v82_v30  ;;  %v786_v37 = vunpack.c.l.bf16 %v860_v26  ;;  %v787_v38 = vunpack.c.h.bf16 %v860_v26  ;;  %v845_v26 = vld [vmem:[%s1207_s0 + $0x10] sm:$0xff]  }
  0x1b   :  { %v401_v40 = vmax.f32 %v385_v31, 0.0  ;;  %v119_v41 = vmax.f32 %v103_v32, 0.0  ;;  %v184_v42 = vadd.f32 %v979_v8, %v168_v33  ;;  %v185_v43 = vadd.f32 %v979_v8, %v169_v34 }
  0x1c   :  { %v416_v45 = vadd.f32 %v400_v35, %v319_v27  ;;  %v120_v46 = vmax.f32 %v104_v36, 0.0  ;;  %v265_v47 = vmul.f32 %v786_v37, %v965_v1  ;;  %v266_v48 = vmul.f32 %v787_v38, %v965_v1 }
  0x1d   :  { %v417_v49 = vadd.f32 %v401_v40, %v320_v28  ;;  %v200_v50 = vmax.f32 %v184_v42, 0.0  ;;  %v201_v51 = vmax.f32 %v185_v43, 0.0  ;;  %v818_v52 = vunpack.c.l.bf16 %v868_v39 }
  0x1e   :  { %v281_v53 = vadd.f32 %v979_v8, %v265_v47  ;;  %v282_v54 = vadd.f32 %v979_v8, %v266_v48  ;;  %v819_v55 = vunpack.c.h.bf16 %v868_v39  ;;  %v738_v56 = vunpack.c.l.bf16 %v848_v44  ;;  %v853_v39 = vld [vmem:[%s1207_s0 + $0x50] sm:$0xff]  }
  0x1f   :  { %v444_v58 = vpack.c.bf16 %v417_v49, %v416_v45  ;;  %v216_v59 = vadd.f32 %v200_v50, %v119_v41  ;;  %v217_v60 = vadd.f32 %v201_v51, %v120_v46  ;;  %v362_v61 = vmul.f32 %v818_v52, %v965_v1  ;;  %v861_v52 = vld [vmem:[%s1207_s0 + $0x90] sm:$0xff]  }
  0x20   :  { %v297_v62 = vmax.f32 %v281_v53, 0.0  ;;  %v298_v63 = vmax.f32 %v282_v54, 0.0  ;;  %v363_v0 = vmul.f32 %v819_v55, %v965_v1  ;;  %v739_v2 = vunpack.c.h.bf16 %v848_v44 }
  0x21   :  { %894 = vmatprep.mubr.msk.bf16.mxu1 %vm449_vm1, %v444_v58  ;;  %v378_v3 = vadd.f32 %v979_v8, %v362_v61  ;;  %v89_v4 = vmul.f32 %v738_v56, %v965_v1  ;;  %v770_v5 = vunpack.c.l.bf16 %v856_v57  ;;  %v771_v6 = vunpack.c.h.bf16 %v856_v57  ;;  %v869_v61 = vld [vmem:[%s1207_s0 + $0xd0] sm:$0xff]  }
  0x22   :  { %v313_v9 = vadd.f32 %v297_v62, %v216_v59  ;;  %v314_v10 = vadd.f32 %v298_v63, %v217_v60  ;;  %v379_v11 = vadd.f32 %v979_v8, %v363_v0  ;;  %v90_v12 = vmul.f32 %v739_v2, %v965_v1 }
  0x23   :  { %v394_v13 = vmax.f32 %v378_v3, 0.0  ;;  %v111_v14 = vadd.f32 %v979_v8, %v89_v4  ;;  %v176_v15 = vmul.f32 %v770_v5, %v965_v1  ;;  %v177_v16 = vmul.f32 %v771_v6, %v965_v1 }
  0x24   :  { %v395_v17 = vmax.f32 %v379_v11, 0.0  ;;  %v112_v18 = vadd.f32 %v979_v8, %v90_v12  ;;  %v802_v19 = vunpack.c.l.bf16 %v864_v7  ;;  %v803_v20 = vunpack.c.h.bf16 %v864_v7  ;;  %v849_v7 = vld [vmem:[%s1207_s0 + $0x30] sm:$0xff]  }
  0x25   :  { %v410_v22 = vadd.f32 %v394_v13, %v313_v9  ;;  %v127_v23 = vmax.f32 %v111_v14, 0.0  ;;  %v192_v24 = vadd.f32 %v979_v8, %v176_v15  ;;  %v193_v25 = vadd.f32 %v979_v8, %v177_v16 }
  0x26   :  { %v411_v27 = vadd.f32 %v395_v17, %v314_v10  ;;  %v128_v28 = vmax.f32 %v112_v18, 0.0  ;;  %v273_v29 = vmul.f32 %v802_v19, %v965_v1  ;;  %v274_v30 = vmul.f32 %v803_v20, %v965_v1 }
  0x27   :  { %v208_v31 = vmax.f32 %v192_v24, 0.0  ;;  %v209_v32 = vmax.f32 %v193_v25, 0.0  ;;  %v834_v33 = vunpack.c.l.bf16 %v872_v21  ;;  %v835_v34 = vunpack.c.h.bf16 %v872_v21  ;;  %v857_v21 = vld [vmem:[%s1207_s0 + $0x70] sm:$0xff]  }
  0x28   :  { %v441_v35 = vpack.c.bf16 %v411_v27, %v410_v22  ;;  %v289_v36 = vadd.f32 %v979_v8, %v273_v29  ;;  %v290_v37 = vadd.f32 %v979_v8, %v274_v30  ;;  %v726_v38 = vunpack.c.l.bf16 %v845_v26 }
  0x29   :  { %v224_v40 = vadd.f32 %v208_v31, %v127_v23  ;;  %v225_v41 = vadd.f32 %v209_v32, %v128_v28  ;;  %v370_v42 = vmul.f32 %v834_v33, %v965_v1  ;;  %v371_v43 = vmul.f32 %v835_v34, %v965_v1  ;;  %v865_v34 = vld [vmem:[%s1207_s0 + $0xb0] sm:$0xff]  }
  0x2a   :  { %887 = vmatmul.mubr.msk.bf16.vlgmr.msra.gmra.mxu0 %vm449_vm1, %v441_v35  ;;  %v305_v44 = vmax.f32 %v289_v36, 0.0  ;;  %v306_v45 = vmax.f32 %v290_v37, 0.0  ;;  %v727_v46 = vunpack.c.h.bf16 %v845_v26  ;;  %v83_v47 = vmul.f32 %v726_v38, %v965_v1 }
  0x2b   :  { %v386_v48 = vadd.f32 %v979_v8, %v370_v42  ;;  %v387_v49 = vadd.f32 %v979_v8, %v371_v43  ;;  %v758_v50 = vunpack.c.l.bf16 %v853_v39  ;;  %v759_v51 = vunpack.c.h.bf16 %v853_v39  ;;  %v873_v43 = vld [vmem:[%s1207_s0 + $0xf0] sm:$0xff]  }
  0x2c   :  { %v321_v53 = vadd.f32 %v305_v44, %v224_v40  ;;  %v322_v54 = vadd.f32 %v306_v45, %v225_v41  ;;  %v84_v55 = vmul.f32 %v727_v46, %v965_v1  ;;  %v105_v56 = vadd.f32 %v979_v8, %v83_v47 }
  0x2d   :  { %v402_v57 = vmax.f32 %v386_v48, 0.0  ;;  %v403_v58 = vmax.f32 %v387_v49, 0.0  ;;  %v170_v59 = vmul.f32 %v758_v50, %v965_v1  ;;  %v171_v60 = vmul.f32 %v759_v51, %v965_v1  ;;  %v846_v48 = vld [vmem:[%s1207_s0 + $0x18] sm:$0xff]  }
  0x2e   :  { %v106_v62 = vadd.f32 %v979_v8, %v84_v55  ;;  %v121_v63 = vmax.f32 %v105_v56, 0.0  ;;  %v790_v0 = vunpack.c.l.bf16 %v861_v52  ;;  %v791_v2 = vunpack.c.h.bf16 %v861_v52 }
  0x2f   :  { %v418_v3 = vadd.f32 %v402_v57, %v321_v53  ;;  %v419_v4 = vadd.f32 %v403_v58, %v322_v54  ;;  %v186_v5 = vadd.f32 %v979_v8, %v170_v59  ;;  %v187_v6 = vadd.f32 %v979_v8, %v171_v60 }
  0x30   :  { %v122_v9 = vmax.f32 %v106_v62, 0.0  ;;  %v267_v10 = vmul.f32 %v790_v0, %v965_v1  ;;  %v268_v11 = vmul.f32 %v791_v2, %v965_v1  ;;  %v822_v12 = vunpack.c.l.bf16 %v869_v61  ;;  %v854_v2 = vld [vmem:[%s1207_s0 + $0x58] sm:$0xff]  }
  0x31   :  { %v445_v13 = vpack.c.bf16 %v419_v4, %v418_v3  ;;  %v202_v14 = vmax.f32 %v186_v5, 0.0  ;;  %v203_v15 = vmax.f32 %v187_v6, 0.0  ;;  %v823_v16 = vunpack.c.h.bf16 %v869_v61 }
  0x32   :  { %v283_v17 = vadd.f32 %v979_v8, %v267_v10  ;;  %v284_v18 = vadd.f32 %v979_v8, %v268_v11  ;;  %v364_v19 = vmul.f32 %v822_v12, %v965_v1  ;;  %v742_v20 = vunpack.c.l.bf16 %v849_v7 }
  0x33   :  { %895 = vmatmul.mubr.msk.bf16.vlgmr.msra.gmra.mxu1 %vm449_vm1, %v445_v13  ;;  %v218_v22 = vadd.f32 %v202_v14, %v121_v63  ;;  %v219_v23 = vadd.f32 %v203_v15, %v122_v9  ;;  %v365_v24 = vmul.f32 %v823_v16, %v965_v1  ;;  %v743_v25 = vunpack.c.h.bf16 %v849_v7  ;;  %v862_v16 = vld [vmem:[%s1207_s0 + $0x98] sm:$0xff]  }
  0x34   :  { %v299_v26 = vmax.f32 %v283_v17, 0.0  ;;  %v300_v27 = vmax.f32 %v284_v18, 0.0  ;;  %v380_v28 = vadd.f32 %v979_v8, %v364_v19  ;;  %v91_v29 = vmul.f32 %v742_v20, %v965_v1 }
  0x35   :  { %v381_v30 = vadd.f32 %v979_v8, %v365_v24  ;;  %v92_v31 = vmul.f32 %v743_v25, %v965_v1  ;;  %v774_v32 = vunpack.c.l.bf16 %v857_v21  ;;  %v775_v33 = vunpack.c.h.bf16 %v857_v21  ;;  %v870_v21 = vld [vmem:[%s1207_s0 + $0xd8] sm:$0xff]  }
  0x36   :  { %v315_v35 = vadd.f32 %v299_v26, %v218_v22  ;;  %v316_v36 = vadd.f32 %v300_v27, %v219_v23  ;;  %v396_v37 = vmax.f32 %v380_v28, 0.0  ;;  %v113_v38 = vadd.f32 %v979_v8, %v91_v29 }
  0x37   :  { %v397_v39 = vmax.f32 %v381_v30, 0.0  ;;  %v114_v40 = vadd.f32 %v979_v8, %v92_v31  ;;  %v178_v41 = vmul.f32 %v774_v32, %v965_v1  ;;  %v179_v42 = vmul.f32 %v775_v33, %v965_v1  ;;  %v850_v30 = vld [vmem:[%s1207_s0 + $0x38] sm:$0xff]  }
  0x38   :  { %v412_v44 = vadd.f32 %v396_v37, %v315_v35  ;;  %v129_v45 = vmax.f32 %v113_v38, 0.0  ;;  %v806_v46 = vunpack.c.l.bf16 %v865_v34  ;;  %v807_v47 = vunpack.c.h.bf16 %v865_v34 }
  0x39   :  { %v413_v49 = vadd.f32 %v397_v39, %v316_v36  ;;  %v130_v50 = vmax.f32 %v114_v40, 0.0  ;;  %v194_v51 = vadd.f32 %v979_v8, %v178_v41  ;;  %v195_v52 = vadd.f32 %v979_v8, %v179_v42 }
  0x3a   :  { %v275_v53 = vmul.f32 %v806_v46, %v965_v1  ;;  %v276_v54 = vmul.f32 %v807_v47, %v965_v1  ;;  %v838_v55 = vunpack.c.l.bf16 %v873_v43  ;;  %v839_v56 = vunpack.c.h.bf16 %v873_v43  ;;  %v858_v47 = vld [vmem:[%s1207_s0 + $0x78] sm:$0xff]  }
  0x3b   :  { %v442_v57 = vpack.c.bf16 %v413_v49, %v412_v44  ;;  %v210_v58 = vmax.f32 %v194_v51, 0.0  ;;  %v211_v59 = vmax.f32 %v195_v52, 0.0  ;;  %v730_v60 = vunpack.c.l.bf16 %v846_v48 }
  0x3c   :  { %v291_v61 = vadd.f32 %v979_v8, %v275_v53  ;;  %v292_v62 = vadd.f32 %v979_v8, %v276_v54  ;;  %v372_v63 = vmul.f32 %v838_v55, %v965_v1  ;;  %v373_v0 = vmul.f32 %v839_v56, %v965_v1  ;;  %v866_v56 = vld [vmem:[%s1207_s0 + $0xb8] sm:$0xff]  }
  0x3d   :  { %890 = vmatprep.mubr.msk.bf16.mxu0 %vm449_vm1, %v442_v57  ;;  %v226_v3 = vadd.f32 %v210_v58, %v129_v45  ;;  %v227_v4 = vadd.f32 %v211_v59, %v130_v50  ;;  %v731_v5 = vunpack.c.h.bf16 %v846_v48  ;;  %v85_v6 = vmul.f32 %v730_v60, %v965_v1 }
  0x3e   :  { %v307_v7 = vmax.f32 %v291_v61, 0.0  ;;  %v308_v9 = vmax.f32 %v292_v62, 0.0  ;;  %v388_v10 = vadd.f32 %v979_v8, %v372_v63  ;;  %v389_v11 = vadd.f32 %v979_v8, %v373_v0 }
  0x3f   :  { %v86_v12 = vmul.f32 %v731_v5, %v965_v1  ;;  %v107_v13 = vadd.f32 %v979_v8, %v85_v6  ;;  %v762_v14 = vunpack.c.l.bf16 %v854_v2  ;;  %v763_v15 = vunpack.c.h.bf16 %v854_v2  ;;  %v874_v2 = vld [vmem:[%s1207_s0 + $0xf8] sm:$0xff]   ;;  %s931_s0 = smov [#allocation3]  }
  0x40   :  { %v323_v17 = vadd.f32 %v307_v7, %v226_v3  ;;  %v324_v18 = vadd.f32 %v308_v9, %v227_v4  ;;  %v404_v19 = vmax.f32 %v388_v10, 0.0  ;;  %v405_v20 = vmax.f32 %v389_v11, 0.0  ;;  %s647_s25 = sshll.u32 %s931_s0, 4  ;;  %s648_s25 = int_to_ptr.vmem [resolvable:$true] %s647_s25 }
  0x41   :  { %v108_v22 = vadd.f32 %v979_v8, %v86_v12  ;;  %v123_v23 = vmax.f32 %v107_v13, 0.0  ;;  %v172_v24 = vmul.f32 %v762_v14, %v965_v1  ;;  %v173_v25 = vmul.f32 %v763_v15, %v965_v1  ;;  %s909_s26 = scalar_lea.vmem %s648_s25, 2048  ;;  %p914_p1 = scmp.lt.s32.totalorder %s648_s25, %s648_s25 }
  0x42   :  { %v420_v26 = vadd.f32 %v404_v19, %v323_v17  ;;  %v421_v27 = vadd.f32 %v405_v20, %v324_v18  ;;  %v794_v28 = vunpack.c.l.bf16 %v862_v16  ;;  %v795_v29 = vunpack.c.h.bf16 %v862_v16  ;;  %p910_p0 = scmp.ne.s32.totalorder %s648_s25, %s909_s26  ;;  %p915_p2 = scmp.lt.s32.totalorder %s909_s26, %s909_s26 }
  0x43   :  { %v124_v31 = vmax.f32 %v108_v22, 0.0  ;;  %v188_v32 = vadd.f32 %v979_v8, %v172_v24  ;;  %v189_v33 = vadd.f32 %v979_v8, %v173_v25  ;;  %v826_v34 = vunpack.c.l.bf16 %v870_v21 }
  0x44   :  { %v446_v35 = vpack.c.bf16 %v421_v27, %v420_v26  ;;  %v269_v36 = vmul.f32 %v794_v28, %v965_v1  ;;  %v270_v37 = vmul.f32 %v795_v29, %v965_v1  ;;  %v827_v38 = vunpack.c.h.bf16 %v870_v21  ;;  %p916_p3 = por %p915_p2, %p914_p1 }
  0x45   :  { %v204_v39 = vmax.f32 %v188_v32, 0.0  ;;  %v205_v40 = vmax.f32 %v189_v33, 0.0  ;;  %v366_v41 = vmul.f32 %v826_v34, %v965_v1  ;;  %v746_v42 = vunpack.c.l.bf16 %v850_v30 }
  0x46   :  { %898 = vmatprep.mubr.msk.bf16.mxu1 %vm449_vm1, %v446_v35  ;;  %v285_v43 = vadd.f32 %v979_v8, %v269_v36  ;;  %v286_v44 = vadd.f32 %v979_v8, %v270_v37  ;;  %v367_v45 = vmul.f32 %v827_v38, %v965_v1  ;;  %v747_v46 = vunpack.c.h.bf16 %v850_v30  ;;  %p917_p4 = pnand %p916_p3, %p910_p0 }
  0x47   :  { %v220_v48 = vadd.f32 %v204_v39, %v123_v23  ;;  %v221_v49 = vadd.f32 %v205_v40, %v124_v31  ;;  %v382_v50 = vadd.f32 %v979_v8, %v366_v41  ;;  %v93_v51 = vmul.f32 %v746_v42, %v965_v1 }
  0x48   :  { %v301_v52 = vmax.f32 %v285_v43, 0.0  ;;  %v302_v53 = vmax.f32 %v286_v44, 0.0  ;;  %v383_v54 = vadd.f32 %v979_v8, %v367_v45  ;;  %v94_v55 = vmul.f32 %v747_v46, %v965_v1 }
  0x49   :  { %v398_v57 = vmax.f32 %v382_v50, 0.0  ;;  %v115_v58 = vadd.f32 %v979_v8, %v93_v51  ;;  %v778_v59 = vunpack.c.l.bf16 %v858_v47  ;;  %v779_v60 = vunpack.c.h.bf16 %v858_v47 }
  0x4a   :  { %v317_v61 = vadd.f32 %v301_v52, %v220_v48  ;;  %v318_v62 = vadd.f32 %v302_v53, %v221_v49  ;;  %v399_v63 = vmax.f32 %v383_v54, 0.0  ;;  %v116_v0 = vadd.f32 %v979_v8, %v94_v55 }
  0x4b   :  { %v131_v3 = vmax.f32 %v115_v58, 0.0  ;;  %v180_v4 = vmul.f32 %v778_v59, %v965_v1  ;;  %v181_v5 = vmul.f32 %v779_v60, %v965_v1  ;;  %v810_v6 = vunpack.c.l.bf16 %v866_v56 }
  0x4c   :  { %v414_v7 = vadd.f32 %v398_v57, %v317_v61  ;;  %v415_v9 = vadd.f32 %v399_v63, %v318_v62  ;;  %v132_v10 = vmax.f32 %v116_v0, 0.0  ;;  %v811_v11 = vunpack.c.h.bf16 %v866_v56 }
  0x4d   :  { %v196_v12 = vadd.f32 %v979_v8, %v180_v4  ;;  %v197_v13 = vadd.f32 %v979_v8, %v181_v5  ;;  %v277_v14 = vmul.f32 %v810_v6, %v965_v1  ;;  %v842_v15 = vunpack.c.l.bf16 %v874_v2 }
  0x4e   :  { %v443_v16 = vpack.c.bf16 %v415_v9, %v414_v7  ;;  %v278_v17 = vmul.f32 %v811_v11, %v965_v1  ;;  %v843_v18 = vunpack.c.h.bf16 %v874_v2 }
  0x4f   :  { %v212_v19 = vmax.f32 %v196_v12, 0.0  ;;  %v213_v20 = vmax.f32 %v197_v13, 0.0  ;;  %v293_v21 = vadd.f32 %v979_v8, %v277_v14  ;;  %v374_v22 = vmul.f32 %v842_v15, %v965_v1 }
  0x50   :  { %891 = vmatmul.mubr.msk.bf16.gmra.mxu0 %vm449_vm1, %v443_v16  ;;  %v294_v23 = vadd.f32 %v979_v8, %v278_v17  ;;  %v375_v24 = vmul.f32 %v843_v18, %v965_v1 }
  0x51   :  { %v228_v25 = vadd.f32 %v212_v19, %v131_v3  ;;  %v229_v26 = vadd.f32 %v213_v20, %v132_v10  ;;  %v309_v27 = vmax.f32 %v293_v21, 0.0  ;;  %v390_v28 = vadd.f32 %v979_v8, %v374_v22 }
  0x52   :  { %v310_v29 = vmax.f32 %v294_v23, 0.0  ;;  %v391_v30 = vadd.f32 %v979_v8, %v375_v24 }
  0x53   :  { %v325_v31 = vadd.f32 %v309_v27, %v228_v25  ;;  %v406_v32 = vmax.f32 %v390_v28, 0.0 }
  0x54   :  { %v326_v33 = vadd.f32 %v310_v29, %v229_v26  ;;  %v407_v34 = vmax.f32 %v391_v30, 0.0 }
  0x55   :  { %v422_v35 = vadd.f32 %v406_v32, %v325_v31 }
  0x56   :  { %v423_v36 = vadd.f32 %v407_v34, %v326_v33 }
  0x58   :  { %v447_v37 = vpack.c.bf16 %v423_v36, %v422_v35 }
  0x5a   :  { %899 = vmatmul.mubr.msk.bf16.gmra.mxu1 %vm449_vm1, %v447_v37 }
  0xea   :  { %v888_v38 = vpop.f32.mrf.mxu0 }
  0xeb   :  { %628 = vst [vmem:[#allocation3 + $0x10] sm:$0xff] %v888_v38 }
  0xec   :  { %v512_v1 = vpop.f32.mrf.mxu0 }
  0xed   :  { %626 = vst [vmem:[#allocation3] sm:$0xff] %v512_v1 }
  0xee   :  { %v889_v39 = vpop.f32.mrf.mxu0 }
  0xef   :  { %629 = vst [vmem:[#allocation3 + $0x18] sm:$0xff] %v889_v39 }
  0xf0   :  { %v515_v40 = vpop.f32.mrf.mxu0 }
  0xf1   :  { %627 = vst [vmem:[#allocation3 + $0x8] sm:$0xff] %v515_v40 }
  0xf3   :  { %v896_v41 = vpop.f32.mrf.mxu1 }
  0xf4   :  { %636 = vst [vmem:[#allocation3 + $0x50] sm:$0xff] %v896_v41 }
  0xf5   :  { %v544_v8 = vpop.f32.mrf.mxu1 }
  0xf6   :  { %634 = vst [vmem:[#allocation3 + $0x40] sm:$0xff] %v544_v8 }
  0xf7   :  { %v897_v42 = vpop.f32.mrf.mxu1 }
  0xf8   :  { %637 = vst [vmem:[#allocation3 + $0x58] sm:$0xff] %v897_v42 }
  0xf9   :  { %v547_v43 = vpop.f32.mrf.mxu1 }
  0xfa   :  { %635 = vst [vmem:[#allocation3 + $0x48] sm:$0xff] %v547_v43 }
 0x110   :  { %v892_v44 = vpop.f32.mrf.mxu0 }
 0x111   :  { %632 = vst [vmem:[#allocation3 + $0x30] sm:$0xff] %v892_v44 }
 0x112   :  { %v528_v45 = vpop.f32.mrf.mxu0 }
 0x113   :  { %630 = vst [vmem:[#allocation3 + $0x20] sm:$0xff] %v528_v45 }
 0x114   :  { %v893_v46 = vpop.f32.mrf.mxu0 }
 0x115   :  { %633 = vst [vmem:[#allocation3 + $0x38] sm:$0xff] %v893_v46 }
 0x116   :  { %v531_v47 = vpop.f32.mrf.mxu0 }
 0x117   :  { %631 = vst [vmem:[#allocation3 + $0x28] sm:$0xff] %v531_v47 }
 0x11a   :  { %v900_v48 = vpop.f32.mrf.mxu1 }
 0x11b   :  { %640 = vst [vmem:[#allocation3 + $0x70] sm:$0xff] %v900_v48 }
 0x11c   :  { %v560_v49 = vpop.f32.mrf.mxu1 }
 0x11d   :  { %638 = vst [vmem:[#allocation3 + $0x60] sm:$0xff] %v560_v49 }
 0x11e   :  { %v901_v50 = vpop.f32.mrf.mxu1 }
 0x11f   :  { %641 = vst [vmem:[#allocation3 + $0x78] sm:$0xff] %v901_v50 }
 0x120   :  { %v563_v51 = vpop.f32.mrf.mxu1 }
 0x121   :  { %639 = vst [vmem:[#allocation3 + $0x68] sm:$0xff] %v563_v51 }
 0x122   :  { %920 = shalt.err (!%p917_p4)
}
 0x123   :  { %s932_s2 = smov 128   ;;  %s933_s27 = smov 8  }
 0x124   :  { %653 = dma.vmem_to_hbm [thread:$0]  %s648_s25, 2048, %s1211_s4, [#allocation4], %s932_s2, %s932_s2, %s933_s27  }
 0x125   :  { %929 = dma.done.wait [#allocation4], 2048  }
 0x126   :  { %930 = vsyncadd [#allocation4], 4294965248 }
 0x127   :  { %657 = vsyncpa [#allocation4], 1 }

</bundles_post_ra>
